<compile_context>
chip_gen: v6e
topology: v6e:2x2x1
jax: 0.10.0
libtpu: 0.0.40
codegen_flags: <defaults>
</compile_context>

<pallas_src>
import functools
import math

import jax
import jax.numpy as jnp
from jax import lax
from jax.experimental import pallas as pl
from jax.experimental.pallas import tpu as pltpu


_LANES = 128
_N_CORES = 2   # leading "parallel" grid axis -> both TCs on v7x, harmless on v5e/v6e


def _round_up(n, m):
    return ((n + m - 1) // m) * m


def _is_pow2(n):
    return n > 0 and (n & (n - 1)) == 0


# ---------------------------------------------------------------------------
# Fast path: lane-dense flat layout, C | 128.
# Accumulates  sum_{valid elements} log_softmax(x)  into a (8,128) block/core.
# ---------------------------------------------------------------------------
def _kl_flat_kernel(x_ref, out_ref, *, n_cols, n_valid, tile_rows, steps_per_core):
    core = pl.program_id(0)
    step = pl.program_id(1)

    @pl.when(step == 0)
    def _():
        out_ref[...] = jnp.zeros_like(out_ref)

    x = x_ref[...].astype(jnp.float32)                       # (tile_rows, 128)
    rows, lanes = x.shape

    lane = lax.broadcasted_iota(jnp.int32, (1, lanes), 1)

    # XOR-butterfly masks for lane-aligned segments of length n_cols.  Rolling
    # the lane-index iota alongside the data makes the partner selection
    # independent of the roll direction convention.
    dists, masks = [], []
    d = 1
    while d < n_cols:
        la = pltpu.roll(lane, shift=d, axis=1)               # source lane of roll(v, d)
        masks.append(la == (lane ^ d))
        dists.append(d)
        d *= 2

    def seg_allreduce(v, op):
        # After log2(n_cols) steps every lane holds op-reduce over its segment.
        for dd, take_a in zip(dists, masks):
            a = pltpu.roll(v, shift=dd, axis=1)
            b = pltpu.roll(v, shift=lanes - dd, axis=1)
            v = op(v, jnp.where(take_a, a, b))
        return v

    m = seg_allreduce(x, jnp.maximum)                        # per-row max (broadcast)
    s = seg_allreduce(jnp.exp(x - m), jnp.add)               # per-row sum(exp) (broadcast)
    logp = x - m - jnp.log(s)                                # log_softmax elementwise

    elems = tile_rows * lanes
    block_start = (core * steps_per_core + step) * elems
    all_valid = block_start + elems <= n_valid

    # Hot path: fully-valid blocks accumulate with a single sublane reduce.
    @pl.when(all_valid)
    def _():
        out_ref[0:1, :] += jnp.sum(logp, axis=0, keepdims=True)

    # Only blocks touching the zero-padded tail pay for the mask.
    @pl.when(jnp.logical_not(all_valid))
    def _():
        row = lax.broadcasted_iota(jnp.int32, (rows, 1), 0)
        idx = block_start + row * lanes + lane               # flat element index
        masked = jnp.where(idx < n_valid, logp, 0.0)
        out_ref[0:1, :] += jnp.sum(masked, axis=0, keepdims=True)


def _clip_kl_logp_sum_fast(x):
    """sum_{b,c} log_softmax(x)[b,c] via the lane-dense flat layout (C | 128)."""
    B, C = x.shape
    n_valid = B * C

    rows_needed = pl.cdiv(n_valid, _LANES)
    bytes_per_row = _LANES * x.dtype.itemsize
    # ~1 MiB DMAs; double-buffered per core this stays ~4 MiB total, far below
    # the scoped-VMEM defaults on v5e (16 MiB) / v6e / v7x (32 MiB).
    tile_rows_cap = max(32, ((1 << 20) // bytes_per_row) // 32 * 32)
    tile_rows = min(tile_rows_cap, _round_up(pl.cdiv(rows_needed, _N_CORES), 32))
    steps_per_core = pl.cdiv(rows_needed, _N_CORES * tile_rows)
    rows_padded = _N_CORES * steps_per_core * tile_rows

    # Row-major (B, C) -> (rows, 128) is a free view; zero-pad only the tail so
    # every block the kernel touches is well defined (pad is masked exactly).
    x_flat = x.reshape(-1)
    pad = rows_padded * _LANES - n_valid
    if pad:
        x_flat = jnp.pad(x_flat, (0, pad))
    x_rows = x_flat.reshape(rows_padded, _LANES)

    out = pl.pallas_call(
        functools.partial(_kl_flat_kernel, n_cols=C, n_valid=n_valid,
                          tile_rows=tile_rows, steps_per_core=steps_per_core),
        out_shape=jax.ShapeDtypeStruct((_N_CORES * 8, _LANES), jnp.float32),
        grid=(_N_CORES, steps_per_core),
        in_specs=[pl.BlockSpec((tile_rows, _LANES),
                               lambda c, i: (c * steps_per_core + i, 0))],
        out_specs=pl.BlockSpec((8, _LANES), lambda c, i: (c, 0)),
        compiler_params=pltpu.CompilerParams(
            dimension_semantics=("parallel", "arbitrary")),
    )(x_rows)
    return jnp.sum(out)


# ---------------------------------------------------------------------------
# General path: any num_clip, row-tiled (tb, C) blocks.
# ---------------------------------------------------------------------------
def _kl_rows_kernel(x_ref, out_ref, *, n_rows, n_cols):
    step = pl.program_id(0)

    @pl.when(step == 0)
    def _():
        out_ref[...] = jnp.zeros_like(out_ref)

    x = x_ref[...].astype(jnp.float32)                       # (tb, C)
    m = jnp.max(x, axis=-1, keepdims=True)
    lse = m + jnp.log(jnp.sum(jnp.exp(x - m), axis=-1, keepdims=True))
    # sum_c log_softmax(x)[b, c] == sum_c x[b, c] - C * logsumexp(x[b, :])
    row_logp = jnp.sum(x, axis=-1, keepdims=True) - n_cols * lse       # (tb, 1)

    tb = x.shape[0]
    row = step * tb + lax.broadcasted_iota(jnp.int32, (tb, 1), 0)
    row_logp = jnp.where(row < n_rows, row_logp, 0.0)                  # ragged tail
    out_ref[0:1, 0:1] += jnp.sum(row_logp, axis=0, keepdims=True)


def _clip_kl_logp_sum_general(x):
    B, C = x.shape
    c_pad = _round_up(C, _LANES)
    cap = max(32, ((4 << 20) // (c_pad * 4)) // 32 * 32)     # <= ~4 MiB padded tile
    tile_b = B if B <= cap else cap
    out = pl.pallas_call(
        functools.partial(_kl_rows_kernel, n_rows=B, n_cols=C),
        out_shape=jax.ShapeDtypeStruct((8, _LANES), jnp.float32),
        grid=(pl.cdiv(B, tile_b),),
        in_specs=[pl.BlockSpec((tile_b, C), lambda i: (i, 0))],
        out_specs=pl.BlockSpec((8, _LANES), lambda i: (0, 0)),
        compiler_params=pltpu.CompilerParams(
            dimension_semantics=("arbitrary",)),
    )(x)
    return jnp.sum(out)


# ---------------------------------------------------------------------------
# Wrapper
# ---------------------------------------------------------------------------
def clip_kl_loss(x, image=None, num_clip=None, loss_weight=1.0, reduction="mean"):
    """Forward of CLIPKLLoss: x are pred logits (B, num_clip); image is NCHW.

    The frozen CLIP branch scores each image against a SINGLE prompt per class,
    so softmax(logits_per_image, -1)[:, 0] == 1.0 identically and the stacked
    target softmax is the uniform distribution 1/num_clip.  That target is
    constant-folded here; if the module is ever changed to multi-prompt targets
    this wrapper must be revisited.
    """
    del image  # only contributes through the provably-constant target
    B, C = x.shape
    if num_clip is not None and C != num_clip:
        raise ValueError(f"x.shape[-1]={C} does not match num_clip={num_clip}")

    if _is_pow2(C) and C <= _LANES:
        logp_sum = _clip_kl_logp_sum_fast(x)
    else:
        logp_sum = _clip_kl_logp_sum_general(x)

    # sum_{b,c} q * (log q - log p)  with q = 1/C (uniform target).
    loss_sum = -B * math.log(C) - logp_sum / C

    if reduction == "mean":          # PyTorch kl_div 'mean': divide by B*C
        scale = loss_weight / (B * C)
    elif reduction == "batchmean":
        scale = loss_weight / B
    elif reduction == "sum":
        scale = loss_weight
    else:
        raise ValueError(f"unsupported reduction: {reduction}")
    return (scale * loss_sum).astype(jnp.float32)


# Pure-JAX reference (faithful to the PyTorch module).
def _ref_loss(x, loss_weight=1.0, reduction="mean"):
    B, C = x.shape
    target = jnp.ones((B, C), jnp.float32)          # CLIP branch output (provably 1s)
    q = jax.nn.softmax(target, axis=-1)
    logp = jax.nn.log_softmax(x.astype(jnp.float32), axis=-1)
    kl = q * (jnp.log(q) - logp)
    if reduction == "mean":
        red = jnp.mean(kl)
    elif reduction == "batchmean":
        red = jnp.sum(kl) / B
    else:
        red = jnp.sum(kl)
    return red * loss_weight


if __name__ == "__main__":
    key = jax.random.PRNGKey(0)
    k1, k2, k3, k4 = jax.random.split(key, 4)

    # Shapes consistent with the module: image NCHW feeds the frozen CLIP branch,
    # x are the predicted per-class logits (B, num_clip).
    B, C_img, H, W = 2, 3, 16, 16
    num_clip = 4
    image = jax.random.normal(k1, (B, C_img, H, W), jnp.float32)
    x = jax.random.normal(k2, (B, num_clip), jnp.float32)

    loss = jax.block_until_ready(clip_kl_loss(x, image, num_clip=num_clip))
    ref = _ref_loss(x)
    assert jnp.allclose(loss, ref, atol=1e-5, rtol=1e-4), (loss, ref)

    # Larger ragged batch, native bf16 logits (fast lane-dense path, masked tail).
    x2 = jax.random.normal(k3, (300, num_clip), jnp.float32).astype(jnp.bfloat16)
    loss2 = jax.block_until_ready(
        clip_kl_loss(x2, None, num_clip=num_clip, loss_weight=0.5))
    ref2 = _ref_loss(x2, loss_weight=0.5)
    assert jnp.allclose(loss2, ref2, atol=1e-4, rtol=1e-4), (loss2, ref2)

    # Non-power-of-two num_clip exercises the general row-tiled path.
    x3 = jax.random.normal(k4, (37, 6), jnp.float32)
    loss3 = jax.block_until_ready(
        clip_kl_loss(x3, None, num_clip=6, loss_weight=2.0, reduction="batchmean"))
    ref3 = _ref_loss(x3, loss_weight=2.0, reduction="batchmean")
    assert jnp.allclose(loss3, ref3, atol=1e-5, rtol=1e-4), (loss3, ref3)

    print("KERNEL_OK")
</pallas_src>

<mosaic_0001>
module attributes {stable_mosaic.version = 11 : i64} {
  func.func @_kl_flat_kernel(%arg0: i32, %arg1: i32, %arg2: memref<32x128xf32, #tpu.memory_space<vmem>>, %arg3: memref<8x128xf32, #tpu.memory_space<vmem>>) attributes {dimension_semantics = [#tpu.dimension_semantics<parallel>, #tpu.dimension_semantics<arbitrary>], iteration_bounds = array<i64: 2, 1>, scalar_prefetch = 0 : i64, scratch_operands = 0 : i64, tpu.core_type = #tpu.core_type<tc>, window_params = [{transform_indices = @transform_0, window_bounds = array<i64: 32, 128>}, {transform_indices = @transform_1, window_bounds = array<i64: 8, 128>}]} {
    %c0_i32 = arith.constant 0 : i32
    %0 = arith.cmpi eq, %arg1, %c0_i32 : i32
    %1 = arith.extui %0 : i1 to i32
    %c0_i32_0 = arith.constant 0 : i32
    %2 = arith.cmpi ne, %1, %c0_i32_0 : i32
    scf.if %2 {
      %cst = arith.constant 0.000000e+00 : f32
      %52 = vector.broadcast %cst : f32 to vector<8x128xf32>
      %c0_14 = arith.constant 0 : index
      %c0_15 = arith.constant 0 : index
      %53 = vector.load %arg3[%c0_14, %c0_15] : memref<8x128xf32, #tpu.memory_space<vmem>>, vector<8x128xf32>
      tpu.vector_store %arg3[%c0_14, %c0_15], %52 {strides = array<i32>} : memref<8x128xf32, #tpu.memory_space<vmem>>, vector<8x128xf32>,
    } else {
    }
    %c0 = arith.constant 0 : index
    %c0_1 = arith.constant 0 : index
    %3 = vector.load %arg2[%c0, %c0_1] : memref<32x128xf32, #tpu.memory_space<vmem>>, vector<32x128xf32>
    %4 = tpu.iota {dimensions = array<i32: 1>} : vector<1x128xi32>
    %c1_i32 = arith.constant 1 : i32
    %5 = tpu.dynamic_rotate %4 by %c1_i32 dim 1 : vector<1x128xi32>, i32 -> vector<1x128xi32>
    %c1_i32_2 = arith.constant 1 : i32
    %6 = vector.broadcast %c1_i32_2 : i32 to vector<1x128xi32>
    %7 = arith.xori %4, %6 : vector<1x128xi32>
    %8 = arith.cmpi eq, %5, %7 : vector<1x128xi32>
    %c2_i32 = arith.constant 2 : i32
    %9 = tpu.dynamic_rotate %4 by %c2_i32 dim 1 : vector<1x128xi32>, i32 -> vector<1x128xi32>
    %c2_i32_3 = arith.constant 2 : i32
    %10 = vector.broadcast %c2_i32_3 : i32 to vector<1x128xi32>
    %11 = arith.xori %4, %10 : vector<1x128xi32>
    %12 = arith.cmpi eq, %9, %11 : vector<1x128xi32>
    %c1_i32_4 = arith.constant 1 : i32
    %13 = tpu.dynamic_rotate %3 by %c1_i32_4 dim 1 : vector<32x128xf32>, i32 -> vector<32x128xf32>
    %c127_i32 = arith.constant 127 : i32
    %14 = tpu.dynamic_rotate %3 by %c127_i32 dim 1 : vector<32x128xf32>, i32 -> vector<32x128xf32>
    %15 = vector.shape_cast %8 : vector<1x128xi1> to vector<1x128xi1>
    %16 = vector.broadcast %15 : vector<1x128xi1> to vector<32x128xi1>
    %17 = arith.select %16, %13, %14 : vector<32x128xi1>, vector<32x128xf32>
    %18 = arith.maximumf %3, %17 : vector<32x128xf32>
    %c2_i32_5 = arith.constant 2 : i32
    %19 = tpu.dynamic_rotate %18 by %c2_i32_5 dim 1 : vector<32x128xf32>, i32 -> vector<32x128xf32>
    %c126_i32 = arith.constant 126 : i32
    %20 = tpu.dynamic_rotate %18 by %c126_i32 dim 1 : vector<32x128xf32>, i32 -> vector<32x128xf32>
    %21 = vector.shape_cast %12 : vector<1x128xi1> to vector<1x128xi1>
    %22 = vector.broadcast %21 : vector<1x128xi1> to vector<32x128xi1>
    %23 = arith.select %22, %19, %20 : vector<32x128xi1>, vector<32x128xf32>
    %24 = arith.maximumf %18, %23 : vector<32x128xf32>
    %25 = arith.subf %3, %24 : vector<32x128xf32>
    %26 = math.exp %25 : vector<32x128xf32>
    %c1_i32_6 = arith.constant 1 : i32
    %27 = tpu.dynamic_rotate %26 by %c1_i32_6 dim 1 : vector<32x128xf32>, i32 -> vector<32x128xf32>
    %c127_i32_7 = arith.constant 127 : i32
    %28 = tpu.dynamic_rotate %26 by %c127_i32_7 dim 1 : vector<32x128xf32>, i32 -> vector<32x128xf32>
    %29 = vector.shape_cast %8 : vector<1x128xi1> to vector<1x128xi1>
    %30 = vector.broadcast %29 : vector<1x128xi1> to vector<32x128xi1>
    %31 = arith.select %30, %27, %28 : vector<32x128xi1>, vector<32x128xf32>
    %32 = arith.addf %26, %31 : vector<32x128xf32>
    %c2_i32_8 = arith.constant 2 : i32
    %33 = tpu.dynamic_rotate %32 by %c2_i32_8 dim 1 : vector<32x128xf32>, i32 -> vector<32x128xf32>
    %c126_i32_9 = arith.constant 126 : i32
    %34 = tpu.dynamic_rotate %32 by %c126_i32_9 dim 1 : vector<32x128xf32>, i32 -> vector<32x128xf32>
    %35 = vector.shape_cast %12 : vector<1x128xi1> to vector<1x128xi1>
    %36 = vector.broadcast %35 : vector<1x128xi1> to vector<32x128xi1>
    %37 = arith.select %36, %33, %34 : vector<32x128xi1>, vector<32x128xf32>
    %38 = arith.addf %32, %37 : vector<32x128xf32>
    %39 = arith.subf %3, %24 : vector<32x128xf32>
    %40 = math.log %38 : vector<32x128xf32>
    %41 = arith.subf %39, %40 : vector<32x128xf32>
    %c1_i32_10 = arith.constant 1 : i32
    %42 = arith.muli %arg0, %c1_i32_10 : i32
    %43 = arith.addi %42, %arg1 : i32
    %c4096_i32 = arith.constant 4096 : i32
    %44 = arith.muli %43, %c4096_i32 : i32
    %c4096_i32_11 = arith.constant 4096 : i32
    %45 = arith.addi %44, %c4096_i32_11 : i32
    %c8_i32 = arith.constant 8 : i32
    %46 = arith.cmpi sle, %45, %c8_i32 : i32
    %47 = arith.extui %46 : i1 to i32
    %c0_i32_12 = arith.constant 0 : i32
    %48 = arith.cmpi ne, %47, %c0_i32_12 : i32
    scf.if %48 {
      %c0_14 = arith.constant 0 : index
      %c0_15 = arith.constant 0 : index
      %52 = vector.load %arg3[%c0_14, %c0_15] : memref<8x128xf32, #tpu.memory_space<vmem>>, vector<1x128xf32>
      %cst = arith.constant dense<0.000000e+00> : vector<128xf32>
      %53 = vector.multi_reduction <add>, %41, %cst [0] : vector<32x128xf32> to vector<128xf32>
      %54 = vector.shape_cast %53 : vector<128xf32> to vector<1x128xf32>
      %55 = arith.addf %52, %54 : vector<1x128xf32>
      %c0_16 = arith.constant 0 : index
      %c0_17 = arith.constant 0 : index
      %56 = vector.load %arg3[%c0_16, %c0_17] : memref<8x128xf32, #tpu.memory_space<vmem>>, vector<1x128xf32>
      tpu.vector_store %arg3[%c0_16, %c0_17], %55 {strides = array<i32>} : memref<8x128xf32, #tpu.memory_space<vmem>>, vector<1x128xf32>,
    } else {
    }
    %true = arith.constant true
    %49 = arith.xori %46, %true : i1
    %50 = arith.extui %49 : i1 to i32
    %c0_i32_13 = arith.constant 0 : i32
    %51 = arith.cmpi ne, %50, %c0_i32_13 : i32
    scf.if %51 {
      %52 = tpu.iota {dimensions = array<i32: 0>} : vector<32x1xi32>
      %c128_i32 = arith.constant 128 : i32
      %53 = vector.broadcast %c128_i32 : i32 to vector<32x1xi32>
      %54 = arith.muli %52, %53 : vector<32x1xi32>
      %55 = vector.broadcast %44 : i32 to vector<32x1xi32>
      %56 = arith.addi %55, %54 : vector<32x1xi32>
      %57 = vector.broadcast %56 : vector<32x1xi32> to vector<32x128xi32>
      %58 = vector.broadcast %4 : vector<1x128xi32> to vector<32x128xi32>
      %59 = arith.addi %57, %58 : vector<32x128xi32>
      %c8_i32_14 = arith.constant 8 : i32
      %60 = vector.broadcast %c8_i32_14 : i32 to vector<32x128xi32>
      %61 = arith.cmpi slt, %59, %60 : vector<32x128xi32>
      %cst = arith.constant 0.000000e+00 : f32
      %62 = vector.broadcast %cst : f32 to vector<32x128xf32>
      %63 = arith.select %61, %41, %62 : vector<32x128xi1>, vector<32x128xf32>
      %c0_15 = arith.constant 0 : index
      %c0_16 = arith.constant 0 : index
      %64 = vector.load %arg3[%c0_15, %c0_16] : memref<8x128xf32, #tpu.memory_space<vmem>>, vector<1x128xf32>
      %cst_17 = arith.constant dense<0.000000e+00> : vector<128xf32>
      %65 = vector.multi_reduction <add>, %63, %cst_17 [0] : vector<32x128xf32> to vector<128xf32>
      %66 = vector.shape_cast %65 : vector<128xf32> to vector<1x128xf32>
      %67 = arith.addf %64, %66 : vector<1x128xf32>
      %c0_18 = arith.constant 0 : index
      %c0_19 = arith.constant 0 : index
      %68 = vector.load %arg3[%c0_18, %c0_19] : memref<8x128xf32, #tpu.memory_space<vmem>>, vector<1x128xf32>
      tpu.vector_store %arg3[%c0_18, %c0_19], %67 {strides = array<i32>} : memref<8x128xf32, #tpu.memory_space<vmem>>, vector<1x128xf32>,
    } else {
    }
    return
  }
  func.func @transform_0(%arg0: i32, %arg1: i32) -> (i32, i32) {
    %c1_i32 = arith.constant 1 : i32
    %0 = arith.muli %arg0, %c1_i32 : i32
    %1 = arith.addi %0, %arg1 : i32
    %c0_i32 = arith.constant 0 : i32
    %c0_i32_0 = arith.constant 0 : i32
    return %1, %c0_i32 : i32, i32
  }
  func.func @transform_1(%arg0: i32, %arg1: i32) -> (i32, i32) {
    %c0_i32 = arith.constant 0 : i32
    %c0_i32_0 = arith.constant 0 : i32
    return %arg0, %c0_i32 : i32, i32
  }
}

</mosaic_0001>

<bundles_post_ra>
// kernel: tpu_custom_call.1
= control target key start
LH: loop header
LB: loop body
LE: loop exit
PB: predicated region body
PF: predicated region fallthrough
CT: control target
= control target key end

     0   :  { %6 = vsyncpa [#allocation3], 0  ;;  %s970_s0 = inlined_call_operand.hbm [shape: f32[64,128], index: 0, kind: input, shape index: {}]   ;;  %s971_s1 = inlined_call_operand.hbm [shape: f32[16,128], index: 1, kind: output, shape index: {}]  }
   0x1   :  { %8 = vsyncpa [#allocation3 + $0x1], 0 }
   0x2   :  { %9 = vsyncpa [#allocation4], 0 }
   0x3   :  { %11 = vsyncpa [#allocation4 + $0x1], 0  ;;  %s691_s6 = smov 0   ;;  %s693_s7 = smov 0  }
   0x4   :  { %s695_s8 = smov 0   ;;  %s697_s9 = smov 0  }
   0x5   :  { %s699_s10 = smov 0   ;;  %s701_s11 = smov 0  }
   0x6 LB: > { %s457_s12 = sadd.s32 4294967295, %s669_s11   ;;  %s458_s13 = sadd.s32 4294967294, %s669_s11   ;;  %s669_s11 = sphi %s701_s11, %s17_s11   ;;  %s665_s10 = sphi %s699_s10, %s982_s10   ;;  %s661_s9 = sphi %s697_s9, %s981_s9   ;;  %s657_s8 = sphi %s695_s8, %s980_s8   ;;  %s653_s7 = sphi %s693_s7, %s979_s7   ;;  %s649_s6 = sphi %s691_s6, %s978_s6  }
   0x7   : > { %s29_s14 = sadd.s32 1, %s665_s10  ;;  %s38_s15 = sadd.s32 1, %s657_s8 }
   0x8   : > { %p31_p0 = scmp.ge.s32.totalorder %s29_s14, 2  ;;  %p45_p1 = scmp.ne.s32.totalorder %s657_s8, %s653_s7 }
   0x9   : > { %p46_p2 = scmp.eq.s32.totalorder %s669_s11, 0  ;;  %p51_p3 = scmp.ne.s32.totalorder %s653_s7, %s649_s6 }
   0xa   : > { %s984_s14 = smov (%p31_p0, %s29_s14), 0  ;;  %p52_p5 = scmp.eq.s32.totalorder %s457_s12, 0 }
   0xb   : > { %p732_p4 = por %p46_p2, %p45_p1  ;;  %s35_s17 = ssub.s32 %s665_s10, %s984_s14 }
   0xc   : > { %p75_p6 = scmp.eq.s32.totalorder %s457_s12, 1  ;;  %p36_p7 = scmp.eq.s32.totalorder %s35_s17, 0 }
   0xd   : > { %p738_p8 = por %p52_p5, %p51_p3  ;;  %p81_p10 = scmp.eq.s32.totalorder %s458_s13, 1 }
   0xe   : > { %p742_p9 = por %p75_p6, %p45_p1  ;;  %p487_p13 = scmp.lt.s32.totalorder %s669_s11, 2 }
   0xf   : > { %s747_s20 = scalar_select %p36_p7, %s657_s8, %s38_s15  }
  0x10   : > { %p749_p11 = por %p81_p10, %p51_p3  ;;  %s101_s22 = sand.u32 1, %s657_s8  }
  0x11   : > { %s461_s23 = sshll.u32 %s101_s22, 5  ;;  %s474_s24 = sshll.u32 %s665_s10, 9 }
  0x12   : > { %s112_s27 = scalar_lea.hbm %s970_s0, %s474_s24  ;;  %s105_s28 = scalar_lea.vmem [#allocation2], %s461_s23 }
  0x13   : > { %s113_s29 = sshll.u32 %s105_s28, 4  ;;  %p762_p0 = pnand %p487_p13, %p732_p4  ;;  %s114_s29 = int_to_ptr.vmem [resolvable:$true] %s113_s29 }
  0x14   : > { %p464_p1 = scmp.ge.s32.totalorder %s669_s11, 1  ;;  %s102_s2 = scalar_lea.sflag [#allocation3], %s101_s22 }
  0x15   : > { %p563_p2 = pneg %p762_p0  ;;  %s574_s3 = scalar_lea.vmem %s114_s29, 512 }
  0x16   : > { %p575_p3 = scmp.ne.s32.totalorder %s114_s29, %s574_s3  ;;  %s671_s4 = smov [#allocation2]  }
  0x17   : > { %s579_s5 = sshll.u32 %s671_s4, 4  ;;  %s580_s5 = int_to_ptr.vmem [resolvable:$false] %s579_s5 }
  0x18   : > { %p577_p5 = pnand %p575_p3, %p563_p2  ;;  %s581_s12 = scalar_lea.vmem %s580_s5, 1024 }
  0x19   : > { %p582_p7 = scmp.lt.s32.totalorder %s114_s29, %s580_s5  ;;  %p583_p10 = scmp.lt.s32.totalorder %s581_s12, %s574_s3 }
  0x1a   : > { %p578_p6 = pneg %p577_p5 }
  0x1b   : > { %p584_p12 = por %p583_p10, %p582_p7 }
  0x1d   : > { %p585_p4 = pnand %p584_p12, %p578_p6 }
  0x1f   : > { %588 = shalt.err (!%p585_p4)
}
  0x20   : > { %s672_s13 = smov 128   ;;  %s673_s15 = smov 8  }
  0x21   : > { %482 = dma.hbm_to_vmem [thread:$0]  (!%p762_p0), %s112_s27, 512, %s114_s29, %s102_s2, %s672_s13, %s672_s13, %s673_s15  }
  0x22   : > { %p121_p13 = scmp.lt.s32.totalorder %s669_s11, 3 }
  0x24   : > { %p122_p2 = pnand %p464_p1, %p121_p13 }
  0x25   : > { %s775_s16 = sand.u32 (!%p122_p2), 1, %s653_s7  }
  0x26   : > { %125 = sbr.rel (%p122_p2) target bundleno = 678 (0x2a6), region = 24  ;;  %s465_s17 = sshll.u32 (!%p122_p2), %s775_s16, 5 }
  0x27   : > { %s128_s22 = scalar_lea.sflag (!%p122_p2), [#allocation3], %s775_s16  ;;  %s131_s23 = scalar_lea.vmem (!%p122_p2), [#allocation2], %s465_s17 }
  0x2b   : > { %640 = dma.done.wait (%p738_p8), %s128_s22, 512  }
  0x2c   : > { %642 = vsyncadd (%p738_p8), %s128_s22, 4294966784  ;;  %s466_s24 = sshll.u32 %s775_s16, 3  ;;  %v161_v0 = vlaneseq  ;;  %v674_v1 = vmov 0.0   ;;  %s675_s26 = smov 1   ;;  %v791_v3 = vld [vmem:[%s131_s23 + $0x8] sm:$0xff]  ;;  %v793_v4 = vld [vmem:[%s131_s23] sm:$0xff] }
  0x2d   : > { %s784_s25 = scalar_lea.vmem [#allocation5], %s466_s24  ;;  %173 = vrot.lane.b32.xlu1 %v791_v3, %s675_s26  ;;  %v799_v5 = vld [vmem:[%s131_s23 + $0x10] sm:$0xff]  ;;  %v801_v6 = vld [vmem:[%s131_s23 + $0x18] sm:$0xff]  ;;  %s676_s18 = smov 127   ;;  %v678_v11 = vmov 0  }
  0x2e   : > { %156 = vst [vmem:[%s784_s25] sm:$0xff] %v674_v1  ;;  %v787_v2 = vand.u32 127, %v161_v0  ;;  %s677_s27 = smov 2   ;;  %v817_v7 = vshrl.u32 %v161_v0, 7  ;;  %s679_s28 = smov 126  }
  0x2f   : > { %s467_s29 = sshll.u32 %s661_s9, 12 }
  0x30   : > { %163 = vrot.lane.b32.xlu0 %v787_v2, %s675_s26  ;;  %v165_v8 = vxor.u32 1, %v787_v2  ;;  %v190_v9 = vsub.s32 0, %v817_v7  ;;  %v169_v28 = vxor.u32 2, %v787_v2  ;;  %s899_s30 = sadd.s32 4096, %s467_s29 }
  0x31   : > { %175 = vrot.lane.b32.xlu1 %v799_v5, %s675_s26  ;;  %p468_p8 = scmp.gt.s32.totalorder %s899_s30, 8 }
  0x34   : > { %171 = vrot.lane.b32.xlu0 %v793_v4, %s675_s26 }
  0x35   : > { %179 = vrot.lane.b32.xlu1 %v793_v4, %s676_s18 }
  0x38   : > { %177 = vrot.lane.b32.xlu0 %v801_v6, %s675_s26 }
  0x39   : > { %183 = vrot.lane.b32.xlu1 %v799_v5, %s676_s18 }
  0x3c   : > { %181 = vrot.lane.b32.xlu0 %v791_v3, %s676_s18 }
  0x3d   : > { %167 = vrot.lane.b32.xlu1 %v787_v2, %s677_s27 }
  0x40   : > { %185 = vrot.lane.b32.xlu0 %v801_v6, %s676_s18 }
  0x9f   : > { %v174_v14 = vpop.permute.xlu1 %173 }
  0xa2   : > { %v164_v10 = vpop.permute.xlu0 %163 }
  0xa3   : > { %vm166_vm0 = vcmp.eq.s32.totalorder %v164_v10, %v165_v8  ;;  %v176_v16 = vpop.permute.xlu1 %175 }
  0xa4   : > { %v187_v12 = vsel %vm166_vm0, 1, %v678_v11 }
  0xa5   : > { %v821_v13 = vrot.slane %v187_v12, %v190_v9 }
  0xa6   : > { %v172_v15 = vpop.permute.xlu0 %171 }
  0xa7   : > { %vm192_vm1 = vcmp.eq.s32.totalorder %v821_v13, 1  ;;  %v180_v18 = vpop.permute.xlu1 %179 }
  0xa8   : > { %v193_v20 = vsel %vm192_vm1, %v172_v15, %v180_v18 }
  0xa9   : > { %v197_v22 = vmax.f32 %v793_v4, %v193_v20 }
  0xaa   : > { %v178_v17 = vpop.permute.xlu0 %177 }
  0xab   : > { %v184_v24 = vpop.permute.xlu1 %183  ;;  %201 = vrot.lane.b32.xlu0 %v197_v22, %s677_s27 }
  0xac   : > { %v195_v26 = vsel %vm192_vm1, %v176_v16, %v184_v24 }
  0xad   : > { %v199_v29 = vmax.f32 %v799_v5, %v195_v26 }
  0xae   : > { %v182_v19 = vpop.permute.xlu0 %181 }
  0xaf   : > { %v194_v21 = vsel %vm192_vm1, %v174_v14, %v182_v19  ;;  %205 = vrot.lane.b32.xlu0 %v199_v29, %s677_s27  ;;  %v168_v31 = vpop.permute.xlu1 %167 }
  0xb0   : > { %v198_v23 = vmax.f32 %v791_v3, %v194_v21  ;;  %vm170_vm2 = vcmp.eq.s32.totalorder %v168_v31, %v169_v28 }
  0xb1   : > { %v217_v32 = vsel %vm170_vm2, 1, %v678_v11 }
  0xb2   : > { %203 = vrot.lane.b32.xlu1 %v198_v23, %s677_s27  ;;  %v186_v25 = vpop.permute.xlu0 %185  ;;  %v841_v33 = vrot.slane %v217_v32, %v190_v9 }
  0xb3   : > { %v196_v27 = vsel %vm192_vm1, %v178_v17, %v186_v25  ;;  %209 = vrot.lane.b32.xlu0 %v197_v22, %s679_s28 }
  0xb4   : > { %v200_v30 = vmax.f32 %v801_v6, %v196_v27  ;;  %vm222_vm3 = vcmp.eq.s32.totalorder %v841_v33, 1 }
  0xb6   : > { %207 = vrot.lane.b32.xlu1 %v200_v30, %s677_s27 }
  0xb7   : > { %213 = vrot.lane.b32.xlu0 %v199_v29, %s679_s28 }
  0xba   : > { %211 = vrot.lane.b32.xlu1 %v198_v23, %s679_s28 }
  0xbe   : > { %215 = vrot.lane.b32.xlu1 %v200_v30, %s679_s28 }
 0x11d   : > { %v202_v35 = vpop.permute.xlu0 %201 }
 0x121   : > { %v206_v37 = vpop.permute.xlu0 %205 }
 0x124   : > { %v204_v34 = vpop.permute.xlu1 %203 }
 0x125   : > { %v210_v39 = vpop.permute.xlu0 %209 }
 0x126   : > { %v223_v41 = vsel %vm222_vm3, %v202_v35, %v210_v39 }
 0x127   : > { %v227_v43 = vmax.f32 %v197_v22, %v223_v41 }
 0x128   : > { %v208_v36 = vpop.permute.xlu1 %207 }
 0x129   : > { %v856_v45 = vsub.f32 %v793_v4, %v227_v43  ;;  %v214_v47 = vpop.permute.xlu0 %213 }
 0x12a   : > { %v225_v49 = vsel %vm222_vm3, %v206_v37, %v214_v47 }
 0x12b   : > { %v235_v51 = vmul.f32 1.442695, %v856_v45  ;;  %v229_v53 = vmax.f32 %v199_v29, %v225_v49 }
 0x12c   : > { %v212_v38 = vpop.permute.xlu1 %211 }
 0x12d   : > { %v224_v40 = vsel %vm222_vm3, %v204_v34, %v212_v38  ;;  %v868_v55 = vsub.f32 %v799_v5, %v229_v53 }
 0x12e   : > { %v228_v42 = vmax.f32 %v198_v23, %v224_v40 }
 0x12f   : > { %v239_v57 = vmul.f32 1.442695, %v868_v55 }
 0x130   : > { %v853_v44 = vsub.f32 %v791_v3, %v228_v42  ;;  %v216_v46 = vpop.permute.xlu1 %215 }
 0x131   : > { %v226_v48 = vsel %vm222_vm3, %v208_v36, %v216_v46 }
 0x132   : > { %v237_v50 = vmul.f32 1.442695, %v853_v44  ;;  %v230_v52 = vmax.f32 %v200_v30, %v226_v48 }
 0x134   : > { %545 = vpow2.f32 %v237_v50  ;;  %v865_v54 = vsub.f32 %v801_v6, %v230_v52 }
 0x135   : > { %547 = vpow2.f32 %v235_v51 }
 0x136   : > { %v241_v56 = vmul.f32 1.442695, %v865_v54 }
 0x138   : > { %549 = vpow2.f32 %v241_v56 }
 0x139   : > { %551 = vpow2.f32 %v239_v57 }
 0x141   : > { %v546_v58 = vpop.eup %545 }
 0x142   : > { %v548_v59 = vpop.eup %547  ;;  %245 = vrot.lane.b32.xlu1 %v546_v58, %s675_s26 }
 0x143   : > { %243 = vrot.lane.b32.xlu0 %v548_v59, %s675_s26 }
 0x145   : > { %v550_v60 = vpop.eup %549 }
 0x146   : > { %v552_v61 = vpop.eup %551  ;;  %249 = vrot.lane.b32.xlu1 %v550_v60, %s675_s26 }
 0x147   : > { %247 = vrot.lane.b32.xlu0 %v552_v61, %s675_s26 }
 0x14a   : > { %253 = vrot.lane.b32.xlu1 %v546_v58, %s676_s18 }
 0x14b   : > { %251 = vrot.lane.b32.xlu0 %v548_v59, %s676_s18 }
 0x14e   : > { %257 = vrot.lane.b32.xlu1 %v550_v60, %s676_s18 }
 0x14f   : > { %255 = vrot.lane.b32.xlu0 %v552_v61, %s676_s18 }
 0x1b4   : > { %v246_v62 = vpop.permute.xlu1 %245 }
 0x1b5   : > { %v244_v63 = vpop.permute.xlu0 %243 }
 0x1b8   : > { %v250_v0 = vpop.permute.xlu1 %249 }
 0x1b9   : > { %v248_v1 = vpop.permute.xlu0 %247 }
 0x1bc   : > { %v254_v3 = vpop.permute.xlu1 %253 }
 0x1bd   : > { %v260_v4 = vsel %vm192_vm1, %v246_v62, %v254_v3  ;;  %v252_v5 = vpop.permute.xlu0 %251 }
 0x1be   : > { %v264_v6 = vadd.f32 %v546_v58, %v260_v4  ;;  %v259_v8 = vsel %vm192_vm1, %v244_v63, %v252_v5 }
 0x1bf   : > { %v263_v9 = vadd.f32 %v548_v59, %v259_v8 }
 0x1c0   : > { %269 = vrot.lane.b32.xlu1 %v264_v6, %s677_s27  ;;  %v258_v10 = vpop.permute.xlu1 %257 }
 0x1c1   : > { %v262_v11 = vsel %vm192_vm1, %v250_v0, %v258_v10  ;;  %267 = vrot.lane.b32.xlu0 %v263_v9, %s677_s27  ;;  %v256_v12 = vpop.permute.xlu0 %255 }
 0x1c2   : > { %v266_v14 = vadd.f32 %v550_v60, %v262_v11  ;;  %v261_v15 = vsel %vm192_vm1, %v248_v1, %v256_v12 }
 0x1c3   : > { %v265_v16 = vadd.f32 %v552_v61, %v261_v15 }
 0x1c4   : > { %273 = vrot.lane.b32.xlu1 %v266_v14, %s677_s27 }
 0x1c5   : > { %271 = vrot.lane.b32.xlu0 %v265_v16, %s677_s27 }
 0x1c8   : > { %277 = vrot.lane.b32.xlu1 %v264_v6, %s679_s28 }
 0x1c9   : > { %275 = vrot.lane.b32.xlu0 %v263_v9, %s679_s28 }
 0x1cc   : > { %281 = vrot.lane.b32.xlu1 %v266_v14, %s679_s28 }
 0x1cd   : > { %279 = vrot.lane.b32.xlu0 %v265_v16, %s679_s28 }
 0x232   : > { %v270_v17 = vpop.permute.xlu1 %269 }
 0x233   : > { %v268_v13 = vpop.permute.xlu0 %267 }
 0x236   : > { %v274_v18 = vpop.permute.xlu1 %273 }
 0x237   : > { %v272_v19 = vpop.permute.xlu0 %271 }
 0x23a   : > { %v278_v20 = vpop.permute.xlu1 %277 }
 0x23b   : > { %v284_v21 = vsel %vm222_vm3, %v270_v17, %v278_v20  ;;  %v276_v22 = vpop.permute.xlu0 %275 }
 0x23c   : > { %v288_v23 = vadd.f32 %v284_v21, %v264_v6  ;;  %v283_v24 = vsel %vm222_vm3, %v268_v13, %v276_v22 }
 0x23d   : > { %v287_v25 = vadd.f32 %v283_v24, %v263_v9 }
 0x23e   : > { %553 = vlog2.f32 %v288_v23  ;;  %v282_v26 = vpop.permute.xlu1 %281 }
 0x23f   : > { %555 = vlog2.f32 %v287_v25  ;;  %v286_v27 = vsel %vm222_vm3, %v274_v18, %v282_v26  ;;  %v280_v28 = vpop.permute.xlu0 %279 }
 0x240   : > { %v290_v29 = vadd.f32 %v286_v27, %v266_v14  ;;  %v285_v30 = vsel %vm222_vm3, %v272_v19, %v280_v28 }
 0x241   : > { %v289_v31 = vadd.f32 %v285_v30, %v265_v16 }
 0x242   : > { %557 = vlog2.f32 %v290_v29 }
 0x243   : > { %559 = vlog2.f32 %v289_v31 }
 0x24b   : > { %v554_v32 = vpop.eup %553 }
 0x24c   : > { %v556_v34 = vpop.eup %555  ;;  %v294_v35 = vmul.f32 0.6931472, %v554_v32 }
 0x24d   : > { %v292_v36 = vmul.f32 0.6931472, %v556_v34 }
 0x24e   : > { %v300_v37 = vsub.f32 %v853_v44, %v294_v35 }
 0x24f   : > { %v558_v38 = vpop.eup %557  ;;  %v299_v39 = vsub.f32 %v856_v45, %v292_v36  ;;  %309 = sbr.rel (%p468_p8) target bundleno = 617 (0x269), region = 36 }
 0x250   : > { %v560_v40 = vpop.eup %559  ;;  %v298_v41 = vmul.f32 0.6931472, %v558_v38 }
 0x251   : > { %v296_v42 = vmul.f32 0.6931472, %v560_v40 }
 0x252   : > { %v302_v43 = vsub.f32 %v865_v54, %v298_v41 }
 0x253   : > { %v301_v33 = vsub.f32 %v868_v55, %v296_v42 }
 0x254   : > { %v311_v46 = vadd.f32 %v300_v37, %v299_v39  ;;  %v310_v52 = vld [vmem:[%s784_s25] sm:$0x1] }
 0x256   : > { %v312_v47 = vadd.f32 %v311_v46, %v301_v33 }
 0x258   : > { %v313_v48 = vadd.f32 %v312_v47, %v302_v43 }
 0x25a   : > { %v314_v49 = vrot.slane %v313_v48, 4 }
 0x25c   : > { %v315_v44 = vadd.f32 %v314_v49, %v313_v48 }
 0x25e   : > { %v316_v50 = vrot.slane %v315_v44, 2 }
 0x260   : > { %v317_v51 = vadd.f32 %v316_v50, %v315_v44 }
 0x262   : > { %v318_v45 = vrot.slane %v317_v51, 1 }
 0x264   : > { %v319_v53 = vadd.f32 %v318_v45, %v317_v51 }
 0x266   : > { %v320_v56 = vadd.f32 %v319_v53, %v310_v52 }
 0x268   : > { %321 = vst [vmem:[%s784_s25] sm:$0x1] %v320_v56 }
 0x269 PF: > { %p469_p12 = scmp.le.s32.totalorder %s899_s30, 8 }
 0x26b   : > { %325 = sbr.rel (%p469_p12) target bundleno = 655 (0x28f), region = 40 }
 0x270   : > { %v328_v54 = vadd.s32 8, %v817_v7  ;;  %v329_v55 = vadd.s32 16, %v817_v7  ;;  %v330_v57 = vadd.s32 24, %v817_v7  ;;  %v331_v58 = vmul.u32 128, %v817_v7  ;;  %v352_v20 = vld [vmem:[%s784_s25] sm:$0x1] }
 0x271   : > { %v335_v59 = vstv %s467_s29 }
 0x272   : > { %v332_v60 = vmul.u32 128, %v328_v54  ;;  %v333_v61 = vmul.u32 128, %v329_v55  ;;  %v336_v62 = vadd.s32 %v335_v59, %v331_v58 }
 0x273   : > { %v334_v63 = vmul.u32 128, %v330_v57 }
 0x274   : > { %v337_v0 = vadd.s32 %v335_v59, %v332_v60  ;;  %v338_v1 = vadd.s32 %v335_v59, %v333_v61  ;;  %v340_v3 = vadd.s32 %v336_v62, %v787_v2 }
 0x275   : > { %v339_v4 = vadd.s32 %v335_v59, %v334_v63 }
 0x276   : > { %v341_v5 = vadd.s32 %v337_v0, %v787_v2  ;;  %v342_v6 = vadd.s32 %v338_v1, %v787_v2  ;;  %vm344_vm4 = vcmp.lt.s32.totalorder %v340_v3, 8 }
 0x277   : > { %v343_v8 = vadd.s32 %v339_v4, %v787_v2  ;;  %v348_v7 = vsel %vm344_vm4, %v299_v39, 0.0 }
 0x278   : > { %vm345_vm5 = vcmp.lt.s32.totalorder %v341_v5, 8  ;;  %vm346_vm6 = vcmp.lt.s32.totalorder %v342_v6, 8 }
 0x279   : > { %vm347_vm7 = vcmp.lt.s32.totalorder %v343_v8, 8  ;;  %v349_v9 = vsel %vm345_vm5, %v300_v37, 0.0  ;;  %v350_v10 = vsel %vm346_vm6, %v301_v33, 0.0 }
 0x27a   : > { %v353_v11 = vadd.f32 %v349_v9, %v348_v7  ;;  %v351_v12 = vsel %vm347_vm7, %v302_v43, 0.0 }
 0x27c   : > { %v354_v14 = vadd.f32 %v353_v11, %v350_v10 }
 0x27e   : > { %v355_v15 = vadd.f32 %v354_v14, %v351_v12 }
 0x280   : > { %v356_v16 = vrot.slane %v355_v15, 4 }
 0x282   : > { %v357_v17 = vadd.f32 %v356_v16, %v355_v15 }
 0x284   : > { %v358_v13 = vrot.slane %v357_v17, 2 }
 0x286   : > { %v359_v18 = vadd.f32 %v358_v13, %v357_v17 }
 0x288   : > { %v360_v19 = vrot.slane %v359_v18, 1 }
 0x28a   : > { %v361_v21 = vadd.f32 %v360_v19, %v359_v18 }
 0x28c   : > { %v362_v2 = vadd.f32 %v361_v21, %v352_v20 }
 0x28e   : > { %363 = vst [vmem:[%s784_s25] sm:$0x1] %v362_v2 }
 0x28f PF: > { %s471_s2 = sshll.u32 %s661_s9, 7  ;;  %s378_s12 = sshll.u32 %s784_s25, 4  ;;  %s379_s12 = int_to_ptr.vmem [resolvable:$true] %s378_s12 }
 0x290   : > { %s376_s5 = scalar_lea.hbm %s971_s1, %s471_s2  ;;  %s365_s13 = scalar_lea.sflag [#allocation4], %s775_s16 }
 0x291   : > { %s589_s15 = scalar_lea.vmem %s379_s12, 128  ;;  %s680_s17 = smov [#allocation5]  }
 0x292   : > { %p590_p0 = scmp.ne.s32.totalorder %s379_s12, %s589_s15  ;;  %s593_s22 = sshll.u32 %s680_s17, 4  ;;  %s594_s22 = int_to_ptr.vmem [resolvable:$false] %s593_s22 }
 0x293   : > { %s595_s23 = scalar_lea.vmem %s594_s22, 256  ;;  %p596_p5 = scmp.lt.s32.totalorder %s379_s12, %s594_s22 }
 0x294   : > { %p591_p1 = pnand %p590_p0, %p742_p9  ;;  %p597_p6 = scmp.lt.s32.totalorder %s595_s23, %s589_s15 }
 0x296   : > { %p592_p3 = pneg %p591_p1  ;;  %p598_p7 = por %p597_p6, %p596_p5 }
 0x298   : > { %p599_p10 = pnand %p598_p7, %p592_p3 }
 0x29a   : > { %602 = shalt.err (!%p599_p10)
}
 0x29b   : > { %s603_s9 = scalar_lea.hbm %s376_s5, 128  ;;  %s607_s25 = scalar_lea.hbm %s971_s1, 256 }
 0x29c   : > { %p604_p4 = scmp.ne.s32.totalorder %s376_s5, %s603_s9  ;;  %p608_p8 = scmp.lt.s32.totalorder %s376_s5, %s971_s1 }
 0x29d   : > { %p609_p12 = scmp.lt.s32.totalorder %s607_s25, %s603_s9 }
 0x29e   : > { %p605_p13 = pnand %p604_p4, %p742_p9 }
 0x29f   : > { %p610_p0 = por %p609_p12, %p608_p8 }
 0x2a0   : > { %p606_p2 = pneg %p605_p13 }
 0x2a2   : > { %p611_p1 = pnand %p610_p0, %p606_p2 }
 0x2a4   : > { %614 = shalt.err (!%p611_p1)
}
 0x2a5   : > { %477 = dma.vmem_to_hbm [thread:$0]  (%p742_p9), %s379_s12, 128, %s376_s5, %s365_s13  }
 0x2a6 PF: > { %s390_s27 = sand.u32 1, %s649_s6   ;;  %p977_p3 = scmp.ge.s32.totalorder %s669_s11, 2 }
 0x2a7   : > { %s391_s28 = scalar_lea.sflag [#allocation4], %s390_s27 }
 0x2a8   : > { %p484_p5 = pnand %p977_p3, %p749_p11 }
 0x2aa   : > { %p485_p6 = pneg %p484_p5 }
 0x2ac   : > { %644 = dma.done.wait (%p485_p6), %s391_s28, 128  }
 0x2ad   : > { %646 = vsyncadd (%p485_p6), %s391_s28, 4294967168  ;;  %s17_s11 = sadd.s32 1, %s669_s11   ;;  %s978_s6 = smov %s653_s7 }
 0x2ae   : > { %p14_p7 = scmp.ge.s32.totalorder %s17_s11, 4   ;;  %s979_s7 = smov %s657_s8 }
 0x2af   : > { %s980_s8 = smov %s747_s20  ;;  %s981_s9 = smov %s665_s10 }
 0x2b0   : > { %s982_s10 = smov %s984_s14  ;;  %16 = sbr.rel (!%p14_p7) target bundleno = 6 (0x6), region = 81 }
 0x2b5   :  { %396 = vsyncpa [#allocation3], 1 }
 0x2b6   :  { %398 = vsyncpa [#allocation3 + $0x1], 1 }
 0x2b7   :  { %399 = vsyncpa [#allocation4], 1 }
 0x2b8   :  { %401 = vsyncpa [#allocation4 + $0x1], 1 }

</bundles_post_ra>
